<compile_context>
chip_gen: v6e
topology: v6e:2x2x1
jax: 0.10.0
libtpu: 0.0.40
codegen_flags: <defaults>
</compile_context>

<pallas_src>
import functools

import jax
import jax.numpy as jnp
from jax.experimental import pallas as pl
from jax.experimental.pallas import tpu as pltpu

_LANE = 128
# Finite pad logit: exp(-1e4) underflows to exactly 0 in f32, so padded/masked
# elements contribute exactly 0 to every partial sum (and it is fp16-safe).
_PAD_LOGIT = -1e4


def _ceil_div(a, b):
    return -(-a // b)


def _dice_focal_kernel(logits_ref, targets_ref, pt_ref, card_ref, focal_ref,
                       *, rows, tile_rows, gamma, needs_row_mask):
    j = pl.program_id(1)

    # First step along this batch element's reduction axis: zero its partials.
    @pl.when(j == 0)
    def _():
        pt_ref[...] = jnp.zeros_like(pt_ref)
        card_ref[...] = jnp.zeros_like(card_ref)
        focal_ref[...] = jnp.zeros_like(focal_ref)

    x = logits_ref[...].astype(jnp.float32)    # (tile_rows, 128)
    t = targets_ref[...].astype(jnp.float32)   # (tile_rows, 128)

    if needs_row_mask:
        # The last tile along the reduction axis extends past `rows`; sanitize
        # the out-of-bounds rows so they contribute exactly zero.
        row_ids = jax.lax.broadcasted_iota(jnp.int32, (tile_rows, _LANE), 0)
        rows_valid = rows - j * tile_rows       # >= tile_rows except last tile
        valid = row_ids < rows_valid
        x = jnp.where(valid, x, _PAD_LOGIT)
        t = jnp.where(valid, t, 0.0)

    # One shared exp(-|x|) feeds both the stable sigmoid and the stable BCE:
    #   sigmoid(x) = 1/(1+e)  if x >= 0  else  e/(1+e)
    #   bce        = max(x, 0) - x*t + log1p(e)     (== BCE-with-logits)
    e = jnp.exp(-jnp.abs(x))
    denom_inv = 1.0 / (1.0 + e)
    p = jnp.where(x >= 0.0, denom_inv, e * denom_inv)
    bce = jnp.maximum(x, 0.0) - x * t + jnp.log1p(e)

    p_t = p * t + (1.0 - p) * (1.0 - t)
    u = 1.0 - p_t
    if gamma == 2.0:
        mod = u * u                              # VPU multiply, no EUP
    elif float(gamma).is_integer() and gamma >= 0.0:
        mod = jnp.ones_like(u)
        for _ in range(int(gamma)):
            mod = mod * u
    else:
        mod = jnp.where(u > 0.0, jnp.power(jnp.maximum(u, 1e-38), gamma), 0.0)
    # alpha folded out of the per-element loop; applied once in the wrapper.
    focal_elem = mod * bce

    # Sublane fold to (8,128): the reshape stays on (8,128) tile boundaries so
    # this is pure vreg-vreg VPU adds; resident accumulators stay at 4 KB each
    # and no full-tile stores hit the scarce vector-store slot.
    def _fold(v):
        return v.reshape(tile_rows // 8, 8, _LANE).sum(axis=0)

    pt_ref[...] += _fold(p * t)
    card_ref[...] += _fold(p + t)
    focal_ref[...] += _fold(focal_elem)


def dice_focal_loss(logits, targets, *,
                    dice_weight=0.6, focal_weight=0.4,
                    focal_gamma=2.0, focal_alpha=0.25, dice_eps=1e-6,
                    max_tile_rows=1024):
    """Composite Dice + Focal loss for [B, ...] logits/targets."""
    B = logits.shape[0]
    N = 1
    for d in logits.shape[1:]:
        N *= d

    # Mirror `targets.float()` only when needed; floating dtypes stream as-is
    # (bf16 halves HBM traffic) and are cast to f32 inside the kernel.
    if not jnp.issubdtype(targets.dtype, jnp.floating):
        targets = targets.astype(jnp.float32)

    logits2d = logits.reshape(B, N)
    targets2d = targets.reshape(B, N)

    # Lane alignment: pad only when N is not a multiple of 128, and only up to
    # the next multiple of 128.  The common aligned case streams HBM directly.
    if N % _LANE != 0:
        pad = _LANE - N % _LANE
        logits2d = jnp.pad(logits2d, ((0, 0), (0, pad)),
                           constant_values=_PAD_LOGIT)
        targets2d = jnp.pad(targets2d, ((0, 0), (0, pad)), constant_values=0)
    rows = logits2d.shape[1] // _LANE

    # Sublane granularity: 8 for 32-bit, 16 for 16-bit, 32 for 8-bit inputs.
    sub = max(8,
              32 // jnp.dtype(logits2d.dtype).itemsize,
              32 // jnp.dtype(targets2d.dtype).itemsize)

    # Large, balanced row tiles; a ragged tail is handled by in-kernel masking
    # (no wrapper-side jnp.pad of the full tensors).
    num_tiles = max(1, _ceil_div(rows, max(max_tile_rows, sub)))
    tile_rows = _ceil_div(_ceil_div(rows, num_tiles), sub) * sub
    num_tiles = _ceil_div(rows, tile_rows)
    needs_row_mask = (rows % tile_rows) != 0

    logits3d = logits2d.reshape(B, rows, _LANE)
    targets3d = targets2d.reshape(B, rows, _LANE)

    kernel = functools.partial(
        _dice_focal_kernel,
        rows=rows, tile_rows=tile_rows, gamma=focal_gamma,
        needs_row_mask=needs_row_mask)

    in_block = (pl.Squeezed(), tile_rows, _LANE)
    out_block = (pl.Squeezed(), 8, _LANE)
    part_shape = jax.ShapeDtypeStruct((B, 8, _LANE), jnp.float32)

    compiler_kwargs = dict(dimension_semantics=("parallel", "arbitrary"))
    vmem_est = (2 * tile_rows * _LANE
                * (logits2d.dtype.itemsize + targets2d.dtype.itemsize)
                + 3 * 2 * 8 * _LANE * 4)
    if vmem_est > 12 * 1024 * 1024:
        # Only raise the scoped limit when a big tile sweep actually needs it;
        # cap well under v7x's 64 MiB physical VMEM.
        compiler_kwargs["vmem_limit_bytes"] = min(
            int(1.5 * vmem_est) + (2 << 20), 48 << 20)

    pt_part, card_part, focal_part = pl.pallas_call(
        kernel,
        out_shape=(part_shape, part_shape, part_shape),
        grid_spec=pltpu.PrefetchScalarGridSpec(
            num_scalar_prefetch=0,
            grid=(B, num_tiles),
            in_specs=[
                pl.BlockSpec(in_block, lambda b, j: (b, j, 0)),
                pl.BlockSpec(in_block, lambda b, j: (b, j, 0)),
            ],
            out_specs=[
                pl.BlockSpec(out_block, lambda b, j: (b, 0, 0)),
                pl.BlockSpec(out_block, lambda b, j: (b, 0, 0)),
                pl.BlockSpec(out_block, lambda b, j: (b, 0, 0)),
            ],
        ),
        compiler_params=pltpu.CompilerParams(**compiler_kwargs),
    )(logits3d, targets3d)

    # Tiny final combine in plain JAX: keeps batches independent so the batch
    # grid axis can run "parallel" across v7x's two TensorCores.
    inter = jnp.sum(pt_part, axis=(1, 2))
    card = jnp.sum(card_part, axis=(1, 2))
    dice_score = (2.0 * inter + dice_eps) / (card + dice_eps)
    dice_loss = 1.0 - jnp.mean(dice_score)
    focal_loss = focal_alpha * jnp.sum(focal_part) / (B * N)
    return dice_weight * dice_loss + focal_weight * focal_loss


def _reference_loss(logits, targets, *,
                    dice_weight=0.6, focal_weight=0.4,
                    gamma=2.0, alpha=0.25, eps=1e-6):
    """Plain-JAX reference mirroring the PyTorch module."""
    x = logits.astype(jnp.float32)
    t = targets.astype(jnp.float32)
    p = jax.nn.sigmoid(x)
    dims = tuple(range(1, x.ndim))
    inter = jnp.sum(p * t, axis=dims)
    card = jnp.sum(p + t, axis=dims)
    dice_score = (2.0 * inter + eps) / (card + eps)
    dice_loss = 1.0 - jnp.mean(dice_score)
    bce = jnp.maximum(x, 0.0) - x * t + jnp.log1p(jnp.exp(-jnp.abs(x)))
    p_t = p * t + (1.0 - p) * (1.0 - t)
    focal_loss = jnp.mean(alpha * (1.0 - p_t) ** gamma * bce)
    return dice_weight * dice_loss + focal_weight * focal_loss


if __name__ == "__main__":
    key = jax.random.PRNGKey(0)
    k1, k2, k3, k4 = jax.random.split(key, 4)

    # Main case: lane-aligned N (C*H*W = 1024), single tile per batch.
    B, C, H, W = 2, 4, 16, 16
    logits = jax.random.normal(k1, (B, C, H, W), dtype=jnp.float32) * 2.0
    targets = (jax.random.uniform(k2, (B, C, H, W)) > 0.5).astype(jnp.float32)

    loss = dice_focal_loss(logits, targets)
    jax.block_until_ready(loss)
    ref = _reference_loss(logits, targets)
    assert jnp.allclose(loss, ref, atol=1e-5, rtol=1e-4), (loss, ref)

    # Ragged case: non-lane-aligned N plus a non-dividing row tile to exercise
    # the small lane pad and the in-kernel tail masking paths.
    B2, C2, H2, W2 = 2, 3, 20, 24
    logits_r = jax.random.normal(k3, (B2, C2, H2, W2), dtype=jnp.float32) * 2.0
    targets_r = (jax.random.uniform(k4, (B2, C2, H2, W2)) > 0.5).astype(jnp.float32)

    loss_r = dice_focal_loss(logits_r, targets_r, max_tile_rows=8)
    jax.block_until_ready(loss_r)
    ref_r = _reference_loss(logits_r, targets_r)
    assert jnp.allclose(loss_r, ref_r, atol=1e-5, rtol=1e-4), (loss_r, ref_r)

    print("KERNEL_OK")
</pallas_src>

<mosaic_0001>
module attributes {stable_mosaic.version = 11 : i64} {
  func.func @_dice_focal_kernel(%arg0: i32, %arg1: i32, %arg2: memref<1x8x128xf32, #tpu.memory_space<vmem>>, %arg3: memref<1x8x128xf32, #tpu.memory_space<vmem>>, %arg4: memref<1x8x128xf32, #tpu.memory_space<vmem>>, %arg5: memref<1x8x128xf32, #tpu.memory_space<vmem>>, %arg6: memref<1x8x128xf32, #tpu.memory_space<vmem>>) attributes {dimension_semantics = [#tpu.dimension_semantics<parallel>, #tpu.dimension_semantics<arbitrary>], iteration_bounds = array<i64: 2, 1>, scalar_prefetch = 0 : i64, scratch_operands = 0 : i64, tpu.core_type = #tpu.core_type<tc>, window_params = [{transform_indices = @transform_0, window_bounds = array<i64: 1, 8, 128>}, {transform_indices = @transform_1, window_bounds = array<i64: 1, 8, 128>}, {transform_indices = @transform_2, window_bounds = array<i64: 1, 8, 128>}, {transform_indices = @transform_3, window_bounds = array<i64: 1, 8, 128>}, {transform_indices = @transform_4, window_bounds = array<i64: 1, 8, 128>}]} {
    %c0_i32 = arith.constant 0 : i32
    %0 = arith.cmpi eq, %arg1, %c0_i32 : i32
    %1 = arith.extui %0 : i1 to i32
    %c0_i32_0 = arith.constant 0 : i32
    %2 = arith.cmpi ne, %1, %c0_i32_0 : i32
    scf.if %2 {
      %cst_34 = arith.constant 0.000000e+00 : f32
      %62 = vector.broadcast %cst_34 : f32 to vector<8x128xf32>
      %c0_35 = arith.constant 0 : index
      %c0_36 = arith.constant 0 : index
      %c0_37 = arith.constant 0 : index
      %63 = vector.load %arg4[%c0_35, %c0_36, %c0_37] : memref<1x8x128xf32, #tpu.memory_space<vmem>>, vector<1x8x128xf32>
      %64 = vector.shape_cast %63 : vector<1x8x128xf32> to vector<8x128xf32>
      %65 = vector.shape_cast %62 : vector<8x128xf32> to vector<1x8x128xf32>
      tpu.vector_store %arg4[%c0_35, %c0_36, %c0_37], %65 {strides = array<i32>} : memref<1x8x128xf32, #tpu.memory_space<vmem>>, vector<1x8x128xf32>,
      %cst_38 = arith.constant 0.000000e+00 : f32
      %66 = vector.broadcast %cst_38 : f32 to vector<8x128xf32>
      %c0_39 = arith.constant 0 : index
      %c0_40 = arith.constant 0 : index
      %c0_41 = arith.constant 0 : index
      %67 = vector.load %arg5[%c0_39, %c0_40, %c0_41] : memref<1x8x128xf32, #tpu.memory_space<vmem>>, vector<1x8x128xf32>
      %68 = vector.shape_cast %67 : vector<1x8x128xf32> to vector<8x128xf32>
      %69 = vector.shape_cast %66 : vector<8x128xf32> to vector<1x8x128xf32>
      tpu.vector_store %arg5[%c0_39, %c0_40, %c0_41], %69 {strides = array<i32>} : memref<1x8x128xf32, #tpu.memory_space<vmem>>, vector<1x8x128xf32>,
      %cst_42 = arith.constant 0.000000e+00 : f32
      %70 = vector.broadcast %cst_42 : f32 to vector<8x128xf32>
      %c0_43 = arith.constant 0 : index
      %c0_44 = arith.constant 0 : index
      %c0_45 = arith.constant 0 : index
      %71 = vector.load %arg6[%c0_43, %c0_44, %c0_45] : memref<1x8x128xf32, #tpu.memory_space<vmem>>, vector<1x8x128xf32>
      %72 = vector.shape_cast %71 : vector<1x8x128xf32> to vector<8x128xf32>
      %73 = vector.shape_cast %70 : vector<8x128xf32> to vector<1x8x128xf32>
      tpu.vector_store %arg6[%c0_43, %c0_44, %c0_45], %73 {strides = array<i32>} : memref<1x8x128xf32, #tpu.memory_space<vmem>>, vector<1x8x128xf32>,
    } else {
    }
    %c0 = arith.constant 0 : index
    %c0_1 = arith.constant 0 : index
    %c0_2 = arith.constant 0 : index
    %3 = vector.load %arg2[%c0, %c0_1, %c0_2] : memref<1x8x128xf32, #tpu.memory_space<vmem>>, vector<1x8x128xf32>
    %4 = vector.shape_cast %3 : vector<1x8x128xf32> to vector<8x128xf32>
    %c0_3 = arith.constant 0 : index
    %c0_4 = arith.constant 0 : index
    %c0_5 = arith.constant 0 : index
    %5 = vector.load %arg3[%c0_3, %c0_4, %c0_5] : memref<1x8x128xf32, #tpu.memory_space<vmem>>, vector<1x8x128xf32>
    %6 = vector.shape_cast %5 : vector<1x8x128xf32> to vector<8x128xf32>
    %7 = math.absf %4 : vector<8x128xf32>
    %cst = arith.constant 0.000000e+00 : f32
    %8 = vector.broadcast %cst : f32 to vector<8x128xf32>
    %9 = arith.subf %8, %7 : vector<8x128xf32>
    %10 = math.exp %9 : vector<8x128xf32>
    %cst_6 = arith.constant 1.000000e+00 : f32
    %11 = vector.broadcast %cst_6 : f32 to vector<8x128xf32>
    %12 = arith.addf %11, %10 : vector<8x128xf32>
    %cst_7 = arith.constant 1.000000e+00 : f32
    %13 = vector.broadcast %cst_7 : f32 to vector<8x128xf32>
    %14 = arith.divf %13, %12 : vector<8x128xf32>
    %cst_8 = arith.constant 0.000000e+00 : f32
    %15 = vector.broadcast %cst_8 : f32 to vector<8x128xf32>
    %16 = arith.cmpf oge, %4, %15 : vector<8x128xf32>
    %17 = arith.mulf %10, %14 : vector<8x128xf32>
    %18 = arith.select %16, %14, %17 : vector<8x128xi1>, vector<8x128xf32>
    %cst_9 = arith.constant 0.000000e+00 : f32
    %19 = vector.broadcast %cst_9 : f32 to vector<8x128xf32>
    %20 = arith.maximumf %4, %19 : vector<8x128xf32>
    %21 = arith.mulf %4, %6 : vector<8x128xf32>
    %22 = arith.subf %20, %21 : vector<8x128xf32>
    %23 = math.log1p %10 : vector<8x128xf32>
    %24 = arith.addf %22, %23 : vector<8x128xf32>
    %25 = arith.mulf %18, %6 : vector<8x128xf32>
    %cst_10 = arith.constant 1.000000e+00 : f32
    %26 = vector.broadcast %cst_10 : f32 to vector<8x128xf32>
    %27 = arith.subf %26, %18 : vector<8x128xf32>
    %cst_11 = arith.constant 1.000000e+00 : f32
    %28 = vector.broadcast %cst_11 : f32 to vector<8x128xf32>
    %29 = arith.subf %28, %6 : vector<8x128xf32>
    %30 = arith.mulf %27, %29 : vector<8x128xf32>
    %31 = arith.addf %25, %30 : vector<8x128xf32>
    %cst_12 = arith.constant 1.000000e+00 : f32
    %32 = vector.broadcast %cst_12 : f32 to vector<8x128xf32>
    %33 = arith.subf %32, %31 : vector<8x128xf32>
    %34 = arith.mulf %33, %33 : vector<8x128xf32>
    %35 = arith.mulf %34, %24 : vector<8x128xf32>
    %c0_13 = arith.constant 0 : index
    %c0_14 = arith.constant 0 : index
    %c0_15 = arith.constant 0 : index
    %36 = vector.load %arg4[%c0_13, %c0_14, %c0_15] : memref<1x8x128xf32, #tpu.memory_space<vmem>>, vector<1x8x128xf32>
    %37 = vector.shape_cast %36 : vector<1x8x128xf32> to vector<8x128xf32>
    %38 = arith.mulf %18, %6 : vector<8x128xf32>
    %39 = vector.shape_cast %38 : vector<8x128xf32> to vector<1x8x128xf32>
    %cst_16 = arith.constant dense<0.000000e+00> : vector<8x128xf32>
    %40 = vector.multi_reduction <add>, %39, %cst_16 [0] : vector<1x8x128xf32> to vector<8x128xf32>
    %41 = arith.addf %37, %40 : vector<8x128xf32>
    %c0_17 = arith.constant 0 : index
    %c0_18 = arith.constant 0 : index
    %c0_19 = arith.constant 0 : index
    %42 = vector.load %arg4[%c0_17, %c0_18, %c0_19] : memref<1x8x128xf32, #tpu.memory_space<vmem>>, vector<1x8x128xf32>
    %43 = vector.shape_cast %42 : vector<1x8x128xf32> to vector<8x128xf32>
    %44 = vector.shape_cast %41 : vector<8x128xf32> to vector<1x8x128xf32>
    tpu.vector_store %arg4[%c0_17, %c0_18, %c0_19], %44 {strides = array<i32>} : memref<1x8x128xf32, #tpu.memory_space<vmem>>, vector<1x8x128xf32>,
    %c0_20 = arith.constant 0 : index
    %c0_21 = arith.constant 0 : index
    %c0_22 = arith.constant 0 : index
    %45 = vector.load %arg5[%c0_20, %c0_21, %c0_22] : memref<1x8x128xf32, #tpu.memory_space<vmem>>, vector<1x8x128xf32>
    %46 = vector.shape_cast %45 : vector<1x8x128xf32> to vector<8x128xf32>
    %47 = arith.addf %18, %6 : vector<8x128xf32>
    %48 = vector.shape_cast %47 : vector<8x128xf32> to vector<1x8x128xf32>
    %cst_23 = arith.constant dense<0.000000e+00> : vector<8x128xf32>
    %49 = vector.multi_reduction <add>, %48, %cst_23 [0] : vector<1x8x128xf32> to vector<8x128xf32>
    %50 = arith.addf %46, %49 : vector<8x128xf32>
    %c0_24 = arith.constant 0 : index
    %c0_25 = arith.constant 0 : index
    %c0_26 = arith.constant 0 : index
    %51 = vector.load %arg5[%c0_24, %c0_25, %c0_26] : memref<1x8x128xf32, #tpu.memory_space<vmem>>, vector<1x8x128xf32>
    %52 = vector.shape_cast %51 : vector<1x8x128xf32> to vector<8x128xf32>
    %53 = vector.shape_cast %50 : vector<8x128xf32> to vector<1x8x128xf32>
    tpu.vector_store %arg5[%c0_24, %c0_25, %c0_26], %53 {strides = array<i32>} : memref<1x8x128xf32, #tpu.memory_space<vmem>>, vector<1x8x128xf32>,
    %c0_27 = arith.constant 0 : index
    %c0_28 = arith.constant 0 : index
    %c0_29 = arith.constant 0 : index
    %54 = vector.load %arg6[%c0_27, %c0_28, %c0_29] : memref<1x8x128xf32, #tpu.memory_space<vmem>>, vector<1x8x128xf32>
    %55 = vector.shape_cast %54 : vector<1x8x128xf32> to vector<8x128xf32>
    %56 = vector.shape_cast %35 : vector<8x128xf32> to vector<1x8x128xf32>
    %cst_30 = arith.constant dense<0.000000e+00> : vector<8x128xf32>
    %57 = vector.multi_reduction <add>, %56, %cst_30 [0] : vector<1x8x128xf32> to vector<8x128xf32>
    %58 = arith.addf %55, %57 : vector<8x128xf32>
    %c0_31 = arith.constant 0 : index
    %c0_32 = arith.constant 0 : index
    %c0_33 = arith.constant 0 : index
    %59 = vector.load %arg6[%c0_31, %c0_32, %c0_33] : memref<1x8x128xf32, #tpu.memory_space<vmem>>, vector<1x8x128xf32>
    %60 = vector.shape_cast %59 : vector<1x8x128xf32> to vector<8x128xf32>
    %61 = vector.shape_cast %58 : vector<8x128xf32> to vector<1x8x128xf32>
    tpu.vector_store %arg6[%c0_31, %c0_32, %c0_33], %61 {strides = array<i32>} : memref<1x8x128xf32, #tpu.memory_space<vmem>>, vector<1x8x128xf32>,
    return
  }
  func.func @transform_0(%arg0: i32, %arg1: i32) -> (i32, i32, i32) {
    %c0_i32 = arith.constant 0 : i32
    %c0_i32_0 = arith.constant 0 : i32
    return %arg0, %arg1, %c0_i32 : i32, i32, i32
  }
  func.func @transform_1(%arg0: i32, %arg1: i32) -> (i32, i32, i32) {
    %c0_i32 = arith.constant 0 : i32
    %c0_i32_0 = arith.constant 0 : i32
    return %arg0, %arg1, %c0_i32 : i32, i32, i32
  }
  func.func @transform_2(%arg0: i32, %arg1: i32) -> (i32, i32, i32) {
    %c0_i32 = arith.constant 0 : i32
    %c0_i32_0 = arith.constant 0 : i32
    %c0_i32_1 = arith.constant 0 : i32
    return %arg0, %c0_i32, %c0_i32_0 : i32, i32, i32
  }
  func.func @transform_3(%arg0: i32, %arg1: i32) -> (i32, i32, i32) {
    %c0_i32 = arith.constant 0 : i32
    %c0_i32_0 = arith.constant 0 : i32
    %c0_i32_1 = arith.constant 0 : i32
    return %arg0, %c0_i32, %c0_i32_0 : i32, i32, i32
  }
  func.func @transform_4(%arg0: i32, %arg1: i32) -> (i32, i32, i32) {
    %c0_i32 = arith.constant 0 : i32
    %c0_i32_0 = arith.constant 0 : i32
    %c0_i32_1 = arith.constant 0 : i32
    return %arg0, %c0_i32, %c0_i32_0 : i32, i32, i32
  }
}

</mosaic_0001>

<bundles_post_ra>
// kernel: tpu_custom_call.1
= control target key start
LH: loop header
LB: loop body
LE: loop exit
PB: predicated region body
PF: predicated region fallthrough
CT: control target
= control target key end

     0   :  { %s1133_s0 = inlined_call_operand.hbm [shape: f32[2,8,128], index: 0, kind: input, shape index: {}]   ;;  %s1134_s1 = inlined_call_operand.hbm [shape: f32[2,8,128], index: 1, kind: input, shape index: {}]   ;;  %s1135_s2 = inlined_call_operand.hbm [shape: f32[2,8,128], index: 2, kind: output, shape index: {0}]   ;;  %s1136_s3 = inlined_call_operand.hbm [shape: f32[2,8,128], index: 3, kind: output, shape index: {1}]   ;;  %s1137_s4 = inlined_call_operand.hbm [shape: f32[2,8,128], index: 4, kind: output, shape index: {2}]  }
   0x1   :  { %1139 = sst [smem:[#allocation15_spill]] %s1133_s0 }
   0x2   :  { %10 = vsyncpa [#allocation3], 0 }
   0x3   :  { %12 = vsyncpa [#allocation3 + $0x1], 0 }
   0x4   :  { %13 = vsyncpa [#allocation6], 0 }
   0x5   :  { %15 = vsyncpa [#allocation6 + $0x1], 0 }
   0x6   :  { %16 = vsyncpa [#allocation4], 0 }
   0x7   :  { %18 = vsyncpa [#allocation4 + $0x1], 0 }
   0x8   :  { %19 = vsyncpa [#allocation9], 0 }
   0x9   :  { %21 = vsyncpa [#allocation9 + $0x1], 0  ;;  %s887_s15 = smov 0   ;;  %s889_s16 = smov 0  }
   0xa   :  { %s891_s17 = smov 0   ;;  %s893_s18 = smov 0  }
   0xb   :  { %s895_s19 = smov 0   ;;  %s897_s20 = smov 0  }
   0xc LB: > { %s918_s21 = sadd.s32 4294967295, %s855_s20   ;;  %s1138_s22 = sadd.s32 4294967294, %s855_s20   ;;  %s855_s20 = sphi %s897_s20, %s27_s20   ;;  %s851_s19 = sphi %s895_s19, %s1155_s19   ;;  %s847_s18 = sphi %s893_s18, %s1154_s18   ;;  %s843_s17 = sphi %s891_s17, %s1153_s17   ;;  %s839_s16 = sphi %s889_s16, %s1152_s16   ;;  %s835_s15 = sphi %s887_s15, %s1151_s15  }
   0xd   : > { %s39_s23 = sadd.s32 1, %s851_s19  ;;  %s48_s24 = sadd.s32 1, %s843_s17 }
   0xe   : > { %p41_p0 = scmp.ge.s32.totalorder %s39_s23, 2  ;;  %p55_p1 = scmp.ne.s32.totalorder %s843_s17, %s839_s16 }
   0xf   : > { %p56_p2 = scmp.eq.s32.totalorder %s855_s20, 0  ;;  %p61_p3 = scmp.ne.s32.totalorder %s839_s16, %s835_s15 }
  0x10   : > { %s1157_s23 = smov (%p41_p0, %s39_s23), 0  ;;  %p62_p5 = scmp.eq.s32.totalorder %s918_s21, 0 }
  0x11   : > { %p930_p4 = por %p56_p2, %p55_p1  ;;  %s43_s26 = ssub.s32 %s851_s19, %s1157_s23 }
  0x12   : > { %p113_p6 = scmp.eq.s32.totalorder %s918_s21, 1  ;;  %p46_p7 = scmp.eq.s32.totalorder %s43_s26, 0 }
  0x13   : > { %p938_p8 = por %p62_p5, %p61_p3  ;;  %p119_p10 = scmp.eq.s32.totalorder %s1138_s22, 1 }
  0x14   : > { %p942_p9 = por %p113_p6, %p55_p1  ;;  %p602_p13 = scmp.lt.s32.totalorder %s855_s20, 2 }
  0x15   : > { %s949_s29 = scalar_select %p46_p7, %s843_s17, %s48_s24  }
  0x16   : > { %p951_p11 = por %p119_p10, %p61_p3  ;;  %s958_s5 = sand.u32 1, %s843_s17  }
  0x17   : > { %s557_s6 = sshll.u32 %s958_s5, 3  ;;  %s558_s7 = sshll.u32 %s851_s19, 7 }
  0x18   : > { %s1144_s0 = sld [smem:[#allocation15_spill]]  ;;  %s195_s11 = scalar_lea.vmem [#allocation2], %s557_s6 }
  0x19   : > { %s203_s12 = sshll.u32 %s195_s11, 4  ;;  %p967_p0 = pnand %p602_p13, %p930_p4  ;;  %s204_s12 = int_to_ptr.vmem [resolvable:$true] %s203_s12 }
  0x1a   : > { %p561_p1 = scmp.ge.s32.totalorder %s855_s20, 1  ;;  %p227_p2 = scmp.lt.s32.totalorder %s855_s20, 3 }
  0x1b   : > { %s192_s14 = scalar_lea.sflag [#allocation3], %s958_s5  ;;  %p661_p3 = pneg %p967_p0 }
  0x1c   : > { %s672_s24 = scalar_lea.vmem %s204_s12, 128  ;;  %s857_s26 = smov [#allocation2]  }
  0x1d   : > { %p673_p5 = scmp.ne.s32.totalorder %s204_s12, %s672_s24  ;;  %s677_s8 = sshll.u32 %s857_s26, 4  ;;  %s678_s8 = int_to_ptr.vmem [resolvable:$false] %s677_s8 }
  0x1e   : > { %s201_s10 = scalar_lea.hbm %s1144_s0, %s558_s7  ;;  %s679_s25 = scalar_lea.vmem %s678_s8, 256 }
  0x1f   : > { %p675_p6 = pnand %p673_p5, %p661_p3  ;;  %p680_p4 = scmp.lt.s32.totalorder %s204_s12, %s678_s8 }
  0x20   : > { %p681_p10 = scmp.lt.s32.totalorder %s679_s25, %s672_s24 }
  0x21   : > { %p676_p7 = pneg %p675_p6 }
  0x22   : > { %p682_p13 = por %p681_p10, %p680_p4 }
  0x24   : > { %p683_p12 = pnand %p682_p13, %p676_p7 }
  0x26   : > { %686 = shalt.err (!%p683_p12)
}
  0x27   : > { %588 = dma.hbm_to_vmem [thread:$0]  (!%p967_p0), %s201_s10, 128, %s204_s12, %s192_s14  }
  0x28   : > { %p985_p5 = pnand %p561_p1, %p227_p2  ;;  %s220_s24 = scalar_lea.hbm %s1134_s1, %s558_s7 }
  0x29   : > { %s214_s8 = scalar_lea.vmem [#allocation5], %s557_s6  ;;  %s211_s22 = scalar_lea.sflag [#allocation6], %s958_s5 }
  0x2a   : > { %s222_s25 = sshll.u32 %s214_s8, 4  ;;  %s858_s10 = smov [#allocation5]   ;;  %s223_s25 = int_to_ptr.vmem [resolvable:$true] %s222_s25 }
  0x2b   : > { %s700_s0 = scalar_lea.vmem %s223_s25, 128  ;;  %s705_s12 = sshll.u32 %s858_s10, 4  ;;  %s706_s12 = int_to_ptr.vmem [resolvable:$false] %s705_s12 }
  0x2c   : > { %p701_p12 = scmp.ne.s32.totalorder %s223_s25, %s700_s0  ;;  %s707_s14 = scalar_lea.vmem %s706_s12, 256 }
  0x2d   : > { %p708_p1 = scmp.lt.s32.totalorder %s223_s25, %s706_s12  ;;  %p709_p2 = scmp.lt.s32.totalorder %s707_s14, %s700_s0 }
  0x2e   : > { %p703_p6 = pnand %p701_p12, %p661_p3 }
  0x2f   : > { %p710_p4 = por %p709_p2, %p708_p1 }
  0x30   : > { %p704_p7 = pneg %p703_p6 }
  0x32   : > { %p711_p10 = pnand %p710_p4, %p704_p7 }
  0x34   : > { %714 = shalt.err (!%p711_p10)
}
  0x35   : > { %591 = dma.hbm_to_vmem [thread:$0]  (!%p967_p0), %s220_s24, 128, %s223_s25, %s211_s22  }
  0x36   : > { %231 = sbr.rel (%p985_p5) target bundleno = 164 (0xa4), region = 28  ;;  %s1001_s5 = sand.u32 (!%p985_p5), 1, %s839_s16  }
  0x37   : > { %s1004_s6 = sshll.u32 (!%p985_p5), %s1001_s5, 3  ;;  %s234_s7 = scalar_lea.sflag (!%p985_p5), [#allocation3], %s1001_s5 }
  0x38   : > { %s237_s0 = scalar_lea.vmem (!%p985_p5), [#allocation2], %s1004_s6 }
  0x3b   : > { %818 = dma.done.wait (%p938_p8), %s234_s7, 128  }
  0x3c   : > { %820 = vsyncadd (%p938_p8), %s234_s7, 4294967168  ;;  %s243_s22 = scalar_lea.sflag [#allocation6], %s1001_s5  ;;  %s246_s13 = scalar_lea.vmem [#allocation5], %s1004_s6 }
  0x3d   : > { %822 = dma.done.wait (%p938_p8), %s243_s22, 128  }
  0x3e   : > { %824 = vsyncadd (%p938_p8), %s243_s22, 4294967168  ;;  %v293_v0 = vld [vmem:[%s237_s0] sm:$0xff]  ;;  %v294_v7 = vld [vmem:[%s246_s13] sm:$0xff]  ;;  %s344_s27 = sand.u32 1, %s918_s21   ;;  %s1020_s9 = sshll.u32 %s847_s18, 7 }
  0x3f   : > { %v295_v1 = vand.u32 2147483647, %v293_v0  ;;  %vm302_vm0 = vcmp.ge.f32.partialorder %v293_v0, 0.0  ;;  %v320_v13 = vsub.f32 1.0, %v294_v7  ;;  %v305_v14 = vmax.f32 %v293_v0, 0.0  ;;  %s278_s11 = scalar_lea.vmem [#allocation8], %s1004_s6  ;;  %s1032_s25 = scalar_lea.hbm %s1136_s3, %s1020_s9 }
  0x40   : > { %v306_v15 = vmul.f32 %v294_v7, %v293_v0  ;;  %s376_s26 = sshll.u32 %s278_s11, 4  ;;  %s271_s24 = scalar_lea.vmem [#allocation7], %s1004_s6  ;;  %s1034_s26 = int_to_ptr.vmem [resolvable:$true] %s376_s26 }
  0x41   : > { %v296_v2 = vsub.f32 0.0, %v295_v1  ;;  %s363_s8 = sshll.u32 %s271_s24, 4  ;;  %s1042_s14 = scalar_lea.hbm %s1135_s2, %s1020_s9  ;;  %s1044_s8 = int_to_ptr.vmem [resolvable:$true] %s363_s8 }
  0x42   : > { %v307_v24 = vsub.f32 %v305_v14, %v306_v15  ;;  %s1046_s7 = scalar_lea.sflag [#allocation9], %s344_s27  ;;  %s715_s0 = scalar_lea.vmem %s1034_s26, 128 }
  0x43   : > { %v297_v3 = vmul.f32 1.442695, %v296_v2  ;;  %p716_p8 = scmp.ne.s32.totalorder %s1034_s26, %s715_s0  ;;  %s859_s22 = smov [#allocation8]  }
  0x44   : > { %s719_s13 = sshll.u32 %s859_s22, 4  ;;  %s720_s13 = int_to_ptr.vmem [resolvable:$false] %s719_s13 }
  0x45   : > { %653 = vpow2.f32 %v297_v3  ;;  %p717_p0 = pnand %p716_p8, %p942_p9  ;;  %s721_s21 = scalar_lea.vmem %s720_s13, 256 }
  0x46   : > { %p722_p13 = scmp.lt.s32.totalorder %s1034_s26, %s720_s13  ;;  %p723_p5 = scmp.lt.s32.totalorder %s721_s21, %s715_s0 }
  0x47   : > { %p718_p3 = pneg %p717_p0 }
  0x48   : > { %p724_p12 = por %p723_p5, %p722_p13 }
  0x4a   : > { %p725_p6 = pnand %p724_p12, %p718_p3 }
  0x52   : > { %v654_v4 = vpop.eup %653 }
  0x53   : > { %v299_v5 = vadd.f32 1.0, %v654_v4  ;;  %v311_v6 = vmul.f32 -0.5, %v654_v4  ;;  %v314_v10 = vand.u32 2147483647, %v654_v4 }
  0x55   : > { %655 = vrcp.f32 %v299_v5  ;;  %v312_v8 = vadd.f32 1.0, %v311_v6  ;;  %vm1023_vm1 = vcmp.lt.f32.partialorder %v314_v10, 0.0004427343 }
  0x56   : > { %657 = vlog2.f32 %v299_v5 }
  0x57   : > { %v313_v18 = vmul.f32 %v654_v4, %v312_v8 }
  0x62   : > { %v656_v9 = vpop.eup %655 }
  0x63   : > { %v658_v11 = vpop.eup %657  ;;  %v303_v12 = vmul.f32 %v656_v9, %v654_v4 }
  0x64   : > { %v310_v17 = vmul.f32 0.6931472, %v658_v11 }
  0x65   : > { %v304_v16 = vsel %vm302_vm0, %v656_v9, %v303_v12 }
  0x66   : > { %v319_v19 = vsub.f32 1.0, %v304_v16  ;;  %v331_v20 = vadd.f32 %v304_v16, %v294_v7  ;;  %v318_v21 = vmul.f32 %v304_v16, %v294_v7  ;;  %v316_v25 = vsel %vm1023_vm1, %v313_v18, %v310_v17 }
  0x68   : > { %v321_v23 = vmul.f32 %v320_v13, %v319_v19  ;;  %334 = vst [vmem:[%s278_s11] sm:$0xff] %v331_v20  ;;  %329 = vst [vmem:[%s271_s24] sm:$0xff] %v318_v21 }
  0x6a   : > { %v322_v26 = vadd.f32 %v321_v23, %v318_v21 }
  0x6b   : > { %728 = shalt.err (!%p725_p6)
}
  0x6c   : > { %s729_s27 = scalar_lea.hbm %s1032_s25, 128  ;;  %s733_s18 = scalar_lea.hbm %s1136_s3, 256 }
  0x6d   : > { %p730_p7 = scmp.ne.s32.totalorder %s1032_s25, %s729_s27  ;;  %p734_p4 = scmp.lt.s32.totalorder %s1032_s25, %s1136_s3 }
  0x6e   : > { %p735_p10 = scmp.lt.s32.totalorder %s733_s18, %s729_s27 }
  0x6f   : > { %p731_p1 = pnand %p730_p7, %p942_p9 }
  0x70   : > { %p736_p8 = por %p735_p10, %p734_p4 }
  0x71   : > { %p732_p2 = pneg %p731_p1 }
  0x73   : > { %p737_p0 = pnand %p736_p8, %p732_p2 }
  0x75   : > { %740 = shalt.err (!%p737_p0)
}
  0x76   : > { %580 = dma.vmem_to_hbm [thread:$0]  (%p942_p9), %s1034_s26, 128, %s1032_s25, %s1046_s7   ;;  %v317_v27 = vadd.f32 %v316_v25, %v307_v24  ;;  %v323_v28 = vsub.f32 1.0, %v322_v26 }
  0x77   : > { %s340_s0 = scalar_lea.sflag [#allocation4], %s1001_s5  ;;  %s741_s22 = scalar_lea.vmem %s1044_s8, 128 }
  0x78   : > { %p742_p3 = scmp.ne.s32.totalorder %s1044_s8, %s741_s22  ;;  %s860_s13 = smov [#allocation7]  }
  0x79   : > { %s745_s21 = sshll.u32 %s860_s13, 4  ;;  %s746_s21 = int_to_ptr.vmem [resolvable:$false] %s745_s21 }
  0x7a   : > { %p743_p13 = pnand %p742_p3, %p942_p9  ;;  %s747_s27 = scalar_lea.vmem %s746_s21, 256 }
  0x7b   : > { %p748_p12 = scmp.lt.s32.totalorder %s1044_s8, %s746_s21  ;;  %p749_p6 = scmp.lt.s32.totalorder %s747_s27, %s741_s22 }
  0x7c   : > { %p744_p5 = pneg %p743_p13 }
  0x7d   : > { %p750_p7 = por %p749_p6, %p748_p12 }
  0x7f   : > { %p751_p1 = pnand %p750_p7, %p744_p5 }
  0x81   : > { %754 = shalt.err (!%p751_p1)
}
  0x82   : > { %s755_s26 = scalar_lea.hbm %s1042_s14, 128  ;;  %s759_s11 = scalar_lea.hbm %s1135_s2, 256 }
  0x83   : > { %p756_p2 = scmp.ne.s32.totalorder %s1042_s14, %s755_s26  ;;  %p760_p8 = scmp.lt.s32.totalorder %s1042_s14, %s1135_s2 }
  0x84   : > { %p761_p0 = scmp.lt.s32.totalorder %s759_s11, %s755_s26 }
  0x85   : > { %p757_p4 = pnand %p756_p2, %p942_p9 }
  0x86   : > { %p762_p3 = por %p761_p0, %p760_p8 }
  0x87   : > { %p758_p10 = pneg %p757_p4 }
  0x89   : > { %p763_p13 = pnand %p762_p3, %p758_p10 }
  0x8b   : > { %766 = shalt.err (!%p763_p13)
}
  0x8c   : > { %579 = dma.vmem_to_hbm [thread:$0]  (%p942_p9), %s1044_s8, 128, %s1042_s14, %s340_s0   ;;  %v324_v29 = vmul.f32 %v323_v28, %v323_v28 }
  0x8d   : > { %s285_s10 = scalar_lea.vmem [#allocation10], %s1004_s6  ;;  %s387_s21 = scalar_lea.hbm %s1137_s4, %s1020_s9 }
  0x8e   : > { %s389_s12 = sshll.u32 %s285_s10, 4  ;;  %v325_v30 = vmul.f32 %v324_v29, %v317_v27  ;;  %s861_s26 = smov [#allocation10]   ;;  %s390_s12 = int_to_ptr.vmem [resolvable:$true] %s389_s12 }
  0x8f   : > { %s767_s27 = scalar_lea.vmem %s390_s12, 128  ;;  %s771_s5 = sshll.u32 %s861_s26, 4  ;;  %s772_s5 = int_to_ptr.vmem [resolvable:$false] %s771_s5 }
  0x90   : > { %338 = vst [vmem:[%s285_s10] sm:$0xff] %v325_v30  ;;  %p768_p5 = scmp.ne.s32.totalorder %s390_s12, %s767_s27  ;;  %s773_s25 = scalar_lea.vmem %s772_s5, 256 }
  0x91   : > { %p774_p7 = scmp.lt.s32.totalorder %s390_s12, %s772_s5  ;;  %p775_p1 = scmp.lt.s32.totalorder %s773_s25, %s767_s27 }
  0x92   : > { %p769_p12 = pnand %p768_p5, %p942_p9 }
  0x93   : > { %p776_p2 = por %p775_p1, %p774_p7 }
  0x94   : > { %p770_p6 = pneg %p769_p12 }
  0x96   : > { %p777_p4 = pnand %p776_p2, %p770_p6 }
  0x98   : > { %780 = shalt.err (!%p777_p4)
}
  0x99   : > { %s781_s6 = scalar_lea.hbm %s387_s21, 128  ;;  %s785_s14 = scalar_lea.hbm %s1137_s4, 256 }
  0x9a   : > { %p782_p10 = scmp.ne.s32.totalorder %s387_s21, %s781_s6  ;;  %p786_p3 = scmp.lt.s32.totalorder %s387_s21, %s1137_s4 }
  0x9b   : > { %p787_p13 = scmp.lt.s32.totalorder %s785_s14, %s781_s6 }
  0x9c   : > { %p783_p8 = pnand %p782_p10, %p942_p9 }
  0x9d   : > { %p788_p5 = por %p787_p13, %p786_p3 }
  0x9e   : > { %p784_p0 = pneg %p783_p8 }
  0xa0   : > { %p789_p12 = pnand %p788_p5, %p784_p0 }
  0xa2   : > { %792 = shalt.err (!%p789_p12)
}
  0xa3   : > { %581 = dma.vmem_to_hbm [thread:$0]  (%p942_p9), %s390_s12, 128, %s387_s21, %s1046_s7  }
  0xa4 PF: > { %s401_s24 = sand.u32 1, %s835_s15   ;;  %p1149_p6 = scmp.ge.s32.totalorder %s855_s20, 2 }
  0xa5   : > { %s402_s18 = scalar_lea.sflag [#allocation4], %s401_s24 }
  0xa6   : > { %p593_p7 = pnand %p1149_p6, %p951_p11 }
  0xa8   : > { %p594_p1 = pneg %p593_p7 }
  0xaa   : > { %826 = dma.done.wait (%p594_p1), %s402_s18, 128  }
  0xab   : > { %828 = vsyncadd (%p594_p1), %s402_s18, 4294967168  ;;  %s1150_s10 = sadd.s32 4294967294, %s855_s20  }
  0xac   : > { %s410_s22 = sand.u32 1, %s1150_s10  }
  0xad   : > { %s411_s13 = scalar_lea.sflag [#allocation9], %s410_s22 }
  0xae   : > { %830 = dma.done.wait (%p594_p1), %s411_s13, 256  }
  0xaf   : > { %832 = vsyncadd (%p594_p1), %s411_s13, 4294967040  ;;  %s27_s20 = sadd.s32 1, %s855_s20   ;;  %s1151_s15 = smov %s839_s16 }
  0xb0   : > { %p24_p9 = scmp.ge.s32.totalorder %s27_s20, 4   ;;  %s1152_s16 = smov %s843_s17 }
  0xb1   : > { %s1153_s17 = smov %s949_s29  ;;  %s1154_s18 = smov %s851_s19 }
  0xb2   : > { %s1155_s19 = smov %s1157_s23  ;;  %26 = sbr.rel (!%p24_p9) target bundleno = 12 (0xc), region = 122 }
  0xb7   :  { %425 = vsyncpa [#allocation3], 1 }
  0xb8   :  { %427 = vsyncpa [#allocation3 + $0x1], 1 }
  0xb9   :  { %428 = vsyncpa [#allocation6], 1 }
  0xba   :  { %430 = vsyncpa [#allocation6 + $0x1], 1 }
  0xbb   :  { %431 = vsyncpa [#allocation4], 1 }
  0xbc   :  { %433 = vsyncpa [#allocation4 + $0x1], 1 }
  0xbd   :  { %434 = vsyncpa [#allocation9], 1 }
  0xbe   :  { %436 = vsyncpa [#allocation9 + $0x1], 1 }

</bundles_post_ra>
